<compile_context>
chip_gen: v5e
topology: v5e:2x2
jax: 0.10.0
libtpu: 0.0.40
codegen_flags: <defaults>
</compile_context>

<pallas_src>
import functools

import jax
import jax.numpy as jnp
from jax.experimental import pallas as pl
from jax.experimental.pallas import tpu as pltpu

LANE = 128          # padded hidden / output width
HIDDEN1_LOGICAL = 80


def _round_up(x, m):
    return ((x + m - 1) // m) * m


def actor_kernel(x_ref, w1_ref, w2_ref, w3_ref, w4_ref, b_ref, o_ref, *,
                 max_action):
    b = b_ref[...]                                   # (4, 128) f32 bias pack
    # Layer 1: Linear(state_dim -> 128 [zero-padded from 80]) + ReLU
    a = jnp.dot(x_ref[...].astype(jnp.bfloat16), w1_ref[...],
                preferred_element_type=jnp.float32)
    a = jnp.maximum(a + b[0:1, :], 0.0)
    # Layer 2: Linear(128 -> 128) + ReLU
    a = jnp.dot(a.astype(jnp.bfloat16), w2_ref[...],
                preferred_element_type=jnp.float32)
    a = jnp.maximum(a + b[1:2, :], 0.0)
    # Layer 3: Linear(128 -> 128) + ReLU
    a = jnp.dot(a.astype(jnp.bfloat16), w3_ref[...],
                preferred_element_type=jnp.float32)
    a = jnp.maximum(a + b[2:3, :], 0.0)
    # Layer 4: Linear(128 -> 128 [zero-padded from output_dim]), max_action*tanh
    a = jnp.dot(a.astype(jnp.bfloat16), w4_ref[...],
                preferred_element_type=jnp.float32)
    a = a + b[3:4, :]
    o_ref[...] = (max_action * jnp.tanh(a)).astype(o_ref.dtype)


def pad_params(params, state_dim, output_dim):
    """Zero-pad logical f32 params: bf16 lane-aligned weights + packed f32 bias."""
    def pad_w(w, rows, cols):
        out = jnp.zeros((rows, cols), jnp.float32)
        out = out.at[: w.shape[0], : w.shape[1]].set(w)
        return out.astype(jnp.bfloat16)

    def pad_b(b):
        out = jnp.zeros((LANE,), jnp.float32)
        return out.at[: b.shape[-1]].set(b.reshape(-1))

    biases = jnp.stack([pad_b(params["b1"]), pad_b(params["b2"]),
                        pad_b(params["b3"]), pad_b(params["b4"])], axis=0)
    return {
        "w1": pad_w(params["w1"], state_dim, LANE),
        "w2": pad_w(params["w2"], LANE, LANE),
        "w3": pad_w(params["w3"], LANE, LANE),
        "w4": pad_w(params["w4"], LANE, LANE),
        "b": biases,                                  # (4, LANE) f32
    }


def _choose_block(B, block_b, min_tiles):
    """Tile size: multiple of 16, last tile nearly full, >=min_tiles when possible."""
    n_tiles = max(pl.cdiv(B, block_b), 1)
    if n_tiles < min_tiles and B >= min_tiles * 16:
        n_tiles = min_tiles                           # keep both v7x TCs busy
    return _round_up(pl.cdiv(B, n_tiles), 16)


def actor_forward(state, padded_params, max_action, output_dim, *,
                  block_b=2048, min_tiles=2, out_dtype=jnp.bfloat16,
                  keep_padded=False):
    """state: (B, state_dim) f32.  padded_params: output of pad_params()."""
    B, state_dim = state.shape
    block = _choose_block(B, block_b, min_tiles)
    Bp = _round_up(B, block)
    if Bp != B:
        state = jnp.zeros((Bp, state_dim), state.dtype).at[:B].set(state)
    grid = (Bp // block,)

    p = padded_params

    def const_spec(shape):                            # weights stay VMEM-resident
        return pl.BlockSpec(shape, lambda i: (0, 0))

    in_specs = [
        pl.BlockSpec((block, state_dim), lambda i: (i, 0)),   # x tiles
        const_spec(p["w1"].shape), const_spec(p["w2"].shape),
        const_spec(p["w3"].shape), const_spec(p["w4"].shape),
        const_spec(p["b"].shape),
    ]
    out_spec = pl.BlockSpec((block, LANE), lambda i: (i, 0))

    out = pl.pallas_call(
        functools.partial(actor_kernel, max_action=max_action),
        out_shape=jax.ShapeDtypeStruct((Bp, LANE), out_dtype),
        grid=grid,
        in_specs=in_specs,
        out_specs=out_spec,
        compiler_params=pltpu.CompilerParams(
            dimension_semantics=("parallel",)),
    )(state, p["w1"], p["w2"], p["w3"], p["w4"], p["b"])

    if keep_padded:
        return out                # (Bp, 128); rows >= B and cols >= output_dim
    return out[:B, :output_dim]   # are padding and must be sliced before use


def init_actor_params(key, state_dim, output_dim):
    """Logical (unpadded) f32 params, nn.Linear-style U[-1/sqrt(fan_in), ...]."""
    dims = [(state_dim, HIDDEN1_LOGICAL), (HIDDEN1_LOGICAL, 128),
            (128, 128), (128, output_dim)]
    params = {}
    for i, (fan_in, fan_out) in enumerate(dims, start=1):
        key, kw, kb = jax.random.split(key, 3)
        bound = 1.0 / jnp.sqrt(fan_in)
        params[f"w{i}"] = jax.random.uniform(
            kw, (fan_in, fan_out), jnp.float32, -bound, bound)
        params[f"b{i}"] = jax.random.uniform(
            kb, (1, fan_out), jnp.float32, -bound, bound)
    return params


def actor_reference(state, params, max_action):
    """Plain-JAX reference emulating the kernel's bf16 matmul inputs."""
    def lin(x, w, b):
        return jnp.dot(x.astype(jnp.bfloat16), w.astype(jnp.bfloat16),
                       preferred_element_type=jnp.float32) + b
    a = jnp.maximum(lin(state, params["w1"], params["b1"]), 0.0)
    a = jnp.maximum(lin(a, params["w2"], params["b2"]), 0.0)
    a = jnp.maximum(lin(a, params["w3"], params["b3"]), 0.0)
    return max_action * jnp.tanh(lin(a, params["w4"], params["b4"]))


if __name__ == "__main__":
    # Small synthetic "env" config (matches the Actor module structure).
    state_dim = 16
    output_dim = 6
    max_action = 2.0

    key = jax.random.PRNGKey(0)
    key, pkey = jax.random.split(key)
    params = init_actor_params(pkey, state_dim, output_dim)
    padded = pad_params(params, state_dim, output_dim)

    # Case 1: tiny batch -> single tile.
    # Case 2: batch=40 -> exercises 2 tiles (v7x path) + padded tail rows.
    for batch in (8, 40):
        key, skey = jax.random.split(key)
        state = jax.random.normal(skey, (batch, state_dim), jnp.float32)

        out = actor_forward(state, padded, max_action, output_dim)
        out = jax.block_until_ready(out)
        assert out.shape == (batch, output_dim)

        ref = actor_reference(state, params, max_action)
        ref_bf16 = ref.astype(jnp.bfloat16).astype(jnp.float32)
        assert jnp.allclose(out.astype(jnp.float32), ref_bf16,
                            atol=1e-2, rtol=1e-2), "mismatch vs reference"

    print("KERNEL_OK")
</pallas_src>

<mosaic_0001>
module attributes {stable_mosaic.version = 11 : i64} {
  func.func @actor_kernel(%arg0: i32, %arg1: memref<16x16xf32, #tpu.memory_space<vmem>>, %arg2: memref<16x128xbf16, #tpu.memory_space<vmem>>, %arg3: memref<128x128xbf16, #tpu.memory_space<vmem>>, %arg4: memref<128x128xbf16, #tpu.memory_space<vmem>>, %arg5: memref<128x128xbf16, #tpu.memory_space<vmem>>, %arg6: memref<4x128xf32, #tpu.memory_space<vmem>>, %arg7: memref<16x128xbf16, #tpu.memory_space<vmem>>) attributes {dimension_semantics = [#tpu.dimension_semantics<parallel>], iteration_bounds = array<i64: 1>, scalar_prefetch = 0 : i64, scratch_operands = 0 : i64, tpu.core_type = #tpu.core_type<tc>, window_params = [{transform_indices = @transform_0, window_bounds = array<i64: 16, 16>}, {pipeline_mode = #tpu.pipeline_mode<synchronous>, transform_indices = @transform_1, window_bounds = array<i64: 16, 128>}, {pipeline_mode = #tpu.pipeline_mode<synchronous>, transform_indices = @transform_2, window_bounds = array<i64: 128, 128>}, {pipeline_mode = #tpu.pipeline_mode<synchronous>, transform_indices = @transform_3, window_bounds = array<i64: 128, 128>}, {pipeline_mode = #tpu.pipeline_mode<synchronous>, transform_indices = @transform_4, window_bounds = array<i64: 128, 128>}, {pipeline_mode = #tpu.pipeline_mode<synchronous>, transform_indices = @transform_5, window_bounds = array<i64: 4, 128>}, {transform_indices = @transform_6, window_bounds = array<i64: 16, 128>}]} {
    %c0 = arith.constant 0 : index
    %c0_0 = arith.constant 0 : index
    %0 = vector.load %arg6[%c0, %c0_0] : memref<4x128xf32, #tpu.memory_space<vmem>>, vector<4x128xf32>
    %c0_1 = arith.constant 0 : index
    %c0_2 = arith.constant 0 : index
    %1 = vector.load %arg1[%c0_1, %c0_2] : memref<16x16xf32, #tpu.memory_space<vmem>>, vector<16x16xf32>
    %2 = arith.truncf %1 : vector<16x16xf32> to vector<16x16xbf16>
    %c0_3 = arith.constant 0 : index
    %c0_4 = arith.constant 0 : index
    %3 = vector.load %arg2[%c0_3, %c0_4] : memref<16x128xbf16, #tpu.memory_space<vmem>>, vector<16x128xbf16>
    %cst = arith.constant dense<0.000000e+00> : vector<16x128xf32>
    %4 = tpu.matmul %2, %3, %cst {dimension_numbers = #tpu.dot_dimension_numbers<[1], [0], [0], [1], [0, 0, 1, 1], [], []>} : vector<16x16xbf16>, vector<16x128xbf16>, vector<16x128xf32> -> vector<16x128xf32>
    %5 = vector.extract_strided_slice %0 {offsets = [0, 0], sizes = [1, 128], strides = [1, 1]} : vector<4x128xf32> to vector<1x128xf32>
    %6 = vector.broadcast %5 : vector<1x128xf32> to vector<16x128xf32>
    %7 = arith.addf %4, %6 : vector<16x128xf32>
    %cst_5 = arith.constant 0.000000e+00 : f32
    %8 = vector.broadcast %cst_5 : f32 to vector<16x128xf32>
    %9 = arith.maximumf %7, %8 : vector<16x128xf32>
    %10 = arith.truncf %9 : vector<16x128xf32> to vector<16x128xbf16>
    %c0_6 = arith.constant 0 : index
    %c0_7 = arith.constant 0 : index
    %11 = vector.load %arg3[%c0_6, %c0_7] : memref<128x128xbf16, #tpu.memory_space<vmem>>, vector<128x128xbf16>
    %cst_8 = arith.constant dense<0.000000e+00> : vector<16x128xf32>
    %12 = tpu.matmul %10, %11, %cst_8 {dimension_numbers = #tpu.dot_dimension_numbers<[1], [0], [0], [1], [0, 0, 1, 1], [], []>} : vector<16x128xbf16>, vector<128x128xbf16>, vector<16x128xf32> -> vector<16x128xf32>
    %13 = vector.extract_strided_slice %0 {offsets = [1, 0], sizes = [1, 128], strides = [1, 1]} : vector<4x128xf32> to vector<1x128xf32>
    %14 = vector.broadcast %13 : vector<1x128xf32> to vector<16x128xf32>
    %15 = arith.addf %12, %14 : vector<16x128xf32>
    %cst_9 = arith.constant 0.000000e+00 : f32
    %16 = vector.broadcast %cst_9 : f32 to vector<16x128xf32>
    %17 = arith.maximumf %15, %16 : vector<16x128xf32>
    %18 = arith.truncf %17 : vector<16x128xf32> to vector<16x128xbf16>
    %c0_10 = arith.constant 0 : index
    %c0_11 = arith.constant 0 : index
    %19 = vector.load %arg4[%c0_10, %c0_11] : memref<128x128xbf16, #tpu.memory_space<vmem>>, vector<128x128xbf16>
    %cst_12 = arith.constant dense<0.000000e+00> : vector<16x128xf32>
    %20 = tpu.matmul %18, %19, %cst_12 {dimension_numbers = #tpu.dot_dimension_numbers<[1], [0], [0], [1], [0, 0, 1, 1], [], []>} : vector<16x128xbf16>, vector<128x128xbf16>, vector<16x128xf32> -> vector<16x128xf32>
    %21 = vector.extract_strided_slice %0 {offsets = [2, 0], sizes = [1, 128], strides = [1, 1]} : vector<4x128xf32> to vector<1x128xf32>
    %22 = vector.broadcast %21 : vector<1x128xf32> to vector<16x128xf32>
    %23 = arith.addf %20, %22 : vector<16x128xf32>
    %cst_13 = arith.constant 0.000000e+00 : f32
    %24 = vector.broadcast %cst_13 : f32 to vector<16x128xf32>
    %25 = arith.maximumf %23, %24 : vector<16x128xf32>
    %26 = arith.truncf %25 : vector<16x128xf32> to vector<16x128xbf16>
    %c0_14 = arith.constant 0 : index
    %c0_15 = arith.constant 0 : index
    %27 = vector.load %arg5[%c0_14, %c0_15] : memref<128x128xbf16, #tpu.memory_space<vmem>>, vector<128x128xbf16>
    %cst_16 = arith.constant dense<0.000000e+00> : vector<16x128xf32>
    %28 = tpu.matmul %26, %27, %cst_16 {dimension_numbers = #tpu.dot_dimension_numbers<[1], [0], [0], [1], [0, 0, 1, 1], [], []>} : vector<16x128xbf16>, vector<128x128xbf16>, vector<16x128xf32> -> vector<16x128xf32>
    %29 = vector.extract_strided_slice %0 {offsets = [3, 0], sizes = [1, 128], strides = [1, 1]} : vector<4x128xf32> to vector<1x128xf32>
    %30 = vector.broadcast %29 : vector<1x128xf32> to vector<16x128xf32>
    %31 = arith.addf %28, %30 : vector<16x128xf32>
    %32 = math.tanh %31 : vector<16x128xf32>
    %cst_17 = arith.constant 2.000000e+00 : f32
    %33 = vector.broadcast %cst_17 : f32 to vector<16x128xf32>
    %34 = arith.mulf %33, %32 : vector<16x128xf32>
    %35 = arith.truncf %34 : vector<16x128xf32> to vector<16x128xbf16>
    %c0_18 = arith.constant 0 : index
    %c0_19 = arith.constant 0 : index
    %36 = vector.load %arg7[%c0_18, %c0_19] : memref<16x128xbf16, #tpu.memory_space<vmem>>, vector<16x128xbf16>
    tpu.vector_store %arg7[%c0_18, %c0_19], %35 {strides = array<i32>} : memref<16x128xbf16, #tpu.memory_space<vmem>>, vector<16x128xbf16>,
    return
  }
  func.func @transform_0(%arg0: i32) -> (i32, i32) {
    %c0_i32 = arith.constant 0 : i32
    %c0_i32_0 = arith.constant 0 : i32
    return %arg0, %c0_i32 : i32, i32
  }
  func.func @transform_1(%arg0: i32) -> (i32, i32) {
    %c0_i32 = arith.constant 0 : i32
    %c0_i32_0 = arith.constant 0 : i32
    %c0_i32_1 = arith.constant 0 : i32
    return %c0_i32, %c0_i32_0 : i32, i32
  }
  func.func @transform_2(%arg0: i32) -> (i32, i32) {
    %c0_i32 = arith.constant 0 : i32
    %c0_i32_0 = arith.constant 0 : i32
    %c0_i32_1 = arith.constant 0 : i32
    return %c0_i32, %c0_i32_0 : i32, i32
  }
  func.func @transform_3(%arg0: i32) -> (i32, i32) {
    %c0_i32 = arith.constant 0 : i32
    %c0_i32_0 = arith.constant 0 : i32
    %c0_i32_1 = arith.constant 0 : i32
    return %c0_i32, %c0_i32_0 : i32, i32
  }
  func.func @transform_4(%arg0: i32) -> (i32, i32) {
    %c0_i32 = arith.constant 0 : i32
    %c0_i32_0 = arith.constant 0 : i32
    %c0_i32_1 = arith.constant 0 : i32
    return %c0_i32, %c0_i32_0 : i32, i32
  }
  func.func @transform_5(%arg0: i32) -> (i32, i32) {
    %c0_i32 = arith.constant 0 : i32
    %c0_i32_0 = arith.constant 0 : i32
    %c0_i32_1 = arith.constant 0 : i32
    return %c0_i32, %c0_i32_0 : i32, i32
  }
  func.func @transform_6(%arg0: i32) -> (i32, i32) {
    %c0_i32 = arith.constant 0 : i32
    %c0_i32_0 = arith.constant 0 : i32
    return %arg0, %c0_i32 : i32, i32
  }
}

</mosaic_0001>

<bundles_post_ra>
// kernel: tpu_custom_call.1
= control target key start
LH: loop header
LB: loop body
LE: loop exit
PB: predicated region body
PF: predicated region fallthrough
CT: control target
= control target key end

     0   :  { %11 = vsyncpa [#allocation3], 0  ;;  %s787_s0 = inlined_call_operand.hbm [shape: f32[16,16], index: 0, kind: input, shape index: {}]   ;;  %s788_s1 = inlined_call_operand.hbm [shape: bf16[16,128], index: 1, kind: input, shape index: {}]   ;;  %s789_s2 = inlined_call_operand.hbm [shape: bf16[128,128], index: 2, kind: input, shape index: {}]   ;;  %s790_s3 = inlined_call_operand.hbm [shape: bf16[128,128], index: 3, kind: input, shape index: {}]   ;;  %s791_s4 = inlined_call_operand.hbm [shape: bf16[128,128], index: 4, kind: input, shape index: {}]   ;;  %s792_s5 = inlined_call_operand.vmem [shape: f32[4,128], index: 5, kind: input, shape index: {}]   ;;  %s793_s6 = inlined_call_operand.hbm [shape: bf16[16,128], index: 6, kind: output, shape index: {}]  }
   0x1   :  { %12 = vsyncpa [#allocation6], 0 }
   0x2   :  { %13 = vsyncpa [#allocation9], 0  ;;  %s32_s23 = sshll.u32 %s788_s1, 4  ;;  %s33_s23 = int_to_ptr.hbm [resolvable:$true] %s32_s23 }
   0x3   :  { %14 = vsyncpa [#allocation4], 0  ;;  %s706_s24 = smov [#allocation5]   ;;  %s58_s28 = sshll.u32 %s790_s3, 4  ;;  %s59_s28 = int_to_ptr.hbm [resolvable:$true] %s58_s28 }
   0x4   :  { %s34_s25 = sshll.u32 %s706_s24, 4  ;;  %s707_s29 = smov 64   ;;  %s35_s25 = int_to_ptr.vmem [resolvable:$true] %s34_s25 }
   0x5   :  { %s708_s30 = smov 4   ;;  %s709_s7 = smov [#allocation8]  }
   0x6   :  { %40 = dma.hbm_to_vmem [thread:$0]  %s33_s23, 128, %s35_s25, [#allocation6], %s707_s29, %s707_s29, %s708_s30  }
   0x7   :  { %s60_s8 = sshll.u32 %s709_s7, 4  ;;  %s19_s10 = sshll.u32 %s787_s0, 4  ;;  %s61_s8 = int_to_ptr.vmem [resolvable:$true] %s60_s8  ;;  %s20_s10 = int_to_ptr.hbm [resolvable:$true] %s19_s10 }
   0x8   :  { %66 = dma.hbm_to_vmem [thread:$0]  %s59_s28, 1024, %s61_s8, [#allocation9], %s707_s29, %s707_s29, %s708_s30  }
   0x9   :  { %s710_s3 = smov [#allocation2]   ;;  %s45_s14 = sshll.u32 %s789_s2, 4  ;;  %s46_s14 = int_to_ptr.hbm [resolvable:$true] %s45_s14 }
   0xa   :  { %s21_s11 = sshll.u32 %s710_s3, 4  ;;  %s711_s15 = smov 128   ;;  %s22_s11 = int_to_ptr.vmem [resolvable:$true] %s21_s11 }
   0xb   :  { %s712_s16 = smov 8   ;;  %s713_s17 = smov [#allocation7]  }
   0xc   :  { %27 = dma.hbm_to_vmem [thread:$0]  %s20_s10, 256, %s22_s11, [#allocation3], %s711_s15, %s711_s15, %s712_s16  }
   0xd   :  { %s47_s18 = sshll.u32 %s713_s17, 4  ;;  %s71_s20 = sshll.u32 %s791_s4, 4  ;;  %s48_s18 = int_to_ptr.vmem [resolvable:$true] %s47_s18  ;;  %s72_s20 = int_to_ptr.hbm [resolvable:$true] %s71_s20 }
   0xe   :  { %53 = dma.hbm_to_vmem [thread:$0]  %s46_s14, 1024, %s48_s18, [#allocation6], %s707_s29, %s707_s29, %s708_s30  }
   0xf   :  { %s714_s21 = smov [#allocation10]  }
  0x10   :  { %s73_s22 = sshll.u32 %s714_s21, 4  ;;  %s74_s22 = int_to_ptr.vmem [resolvable:$true] %s73_s22 }
  0x11   :  { %79 = dma.hbm_to_vmem [thread:$0]  %s72_s20, 1024, %s74_s22, [#allocation9], %s707_s29, %s707_s29, %s708_s30  }
  0x12   :  { %698 = dma.done.wait [#allocation3], 256  }
  0x13   :  { %699 = vsyncadd [#allocation3], 4294967040 }
  0x14   :  { %700 = dma.done.wait [#allocation6], 1152  }
  0x15   :  { %701 = vsyncadd [#allocation6], 4294966144 }
  0x16   :  { %702 = dma.done.wait [#allocation9], 2048  }
  0x17   :  { %703 = vsyncadd [#allocation9], 4294965248  ;;  %v510_v0 = vld [vmem:[#allocation5] sm:$0xff]  ;;  %v104_v1 = vld [vmem:[#allocation2] sm:$0xff]  ;;  %vm116_vm0 = vcmask 130048   ;;  %s394_s26 = sshll.u32 %s793_s6, 4  ;;  %s395_s26 = int_to_ptr.hbm [resolvable:$true] %s394_s26 }
  0x18   :  { %v105_v2 = vld [vmem:[#allocation2 + $0x8] sm:$0xff]  ;;  %v518_v4 = vld [vmem:[#allocation7 + $0x38] sm:$0xff]  ;;  %127 = vmatpush.bf16.msra.mxu0 %v510_v0  ;;  %v516_v6 = vld [vmem:[#allocation7 + $0x28] sm:$0xff] }
  0x19   :  { %v106_v3 = vpack.c.bf16 %v105_v2, %v104_v1  ;;  %202 = vmatpush.bf16.msra.mxu1 %v518_v4  ;;  %v517_v5 = vld [vmem:[#allocation7 + $0x30] sm:$0xff]  ;;  %v515_v7 = vld [vmem:[#allocation7 + $0x20] sm:$0xff]  ;;  %v514_v8 = vld [vmem:[#allocation7 + $0x18] sm:$0xff] }
  0x1a   :  { %v513_v9 = vld [vmem:[#allocation7 + $0x10] sm:$0xff]  ;;  %v512_v10 = vld [vmem:[#allocation7 + $0x8] sm:$0xff]  ;;  %v511_v11 = vld [vmem:[#allocation7] sm:$0xff] }
  0x1b   :  { %413 = vmatmul.msk.bf16.vlgmr.msra.gmra.mxu0 %vm116_vm0, %v106_v3  ;;  %v526_v12 = vld [vmem:[#allocation8 + $0x38] sm:$0xff]  ;;  %v525_v13 = vld [vmem:[#allocation8 + $0x30] sm:$0xff]  ;;  %v524_v14 = vld [vmem:[#allocation8 + $0x28] sm:$0xff] }
  0x1c   :  { %284 = vmatpush.bf16.msra.mxu2 %v526_v12  ;;  %v523_v15 = vld [vmem:[#allocation8 + $0x20] sm:$0xff]  ;;  %v103_v16 = vld [vmem:[%s792_s5] sm:$0xf]  ;;  %v522_v25 = vld [vmem:[#allocation8 + $0x18] sm:$0xff]  ;;  %s715_s5 = smov [#allocation11]  }
  0x1d   :  { %203 = vmatpush.bf16.msra.mxu1 %v517_v5  ;;  %v109_v18 = vperm.slane %v103_v16, 0  ;;  %v521_v26 = vld [vmem:[#allocation8 + $0x10] sm:$0xff]  ;;  %v520_v27 = vld [vmem:[#allocation8 + $0x8] sm:$0xff]  ;;  %v519_v28 = vld [vmem:[#allocation8] sm:$0xff]  ;;  %v153_v34 = vperm.slane %v103_v16, 1  ;;  %v235_v46 = vperm.slane %v103_v16, 2 }
  0x1e   :  { %v534_v29 = vld [vmem:[#allocation10 + $0x38] sm:$0xff]  ;;  %v533_v30 = vld [vmem:[#allocation10 + $0x30] sm:$0xff]  ;;  %v532_v31 = vld [vmem:[#allocation10 + $0x28] sm:$0xff]  ;;  %v317_v54 = vperm.slane %v103_v16, 3  ;;  %s392_s23 = sshll.u32 %s715_s5, 4  ;;  %s393_s23 = int_to_ptr.vmem [resolvable:$true] %s392_s23 }
  0x1f   :  { %366 = vmatpush.bf16.msra.mxu3 %v534_v29  ;;  %v531_v32 = vld [vmem:[#allocation10 + $0x20] sm:$0xff]  ;;  %v530_v41 = vld [vmem:[#allocation10 + $0x18] sm:$0xff]  ;;  %v529_v42 = vld [vmem:[#allocation10 + $0x10] sm:$0xff] }
  0x20   :  { %285 = vmatpush.bf16.msra.mxu2 %v525_v13  ;;  %v528_v43 = vld [vmem:[#allocation10 + $0x8] sm:$0xff]  ;;  %v527_v44 = vld [vmem:[#allocation10] sm:$0xff] }
  0x21   :  { %204 = vmatpush.bf16.msra.mxu1 %v516_v6 }
  0x23   :  { %367 = vmatpush.bf16.msra.mxu3 %v533_v30 }
  0x24   :  { %286 = vmatpush.bf16.msra.mxu2 %v524_v14 }
  0x25   :  { %205 = vmatpush.bf16.msra.mxu1 %v515_v7 }
  0x27   :  { %368 = vmatpush.bf16.msra.mxu3 %v532_v31 }
  0x28   :  { %287 = vmatpush.bf16.msra.mxu2 %v523_v15 }
  0x29   :  { %206 = vmatpush.bf16.msra.mxu1 %v514_v8 }
  0x2b   :  { %369 = vmatpush.bf16.msra.mxu3 %v531_v32 }
  0x2c   :  { %288 = vmatpush.bf16.msra.mxu2 %v522_v25 }
  0x2d   :  { %207 = vmatpush.bf16.msra.mxu1 %v513_v9 }
  0x2f   :  { %370 = vmatpush.bf16.msra.mxu3 %v530_v41 }
  0x30   :  { %289 = vmatpush.bf16.msra.mxu2 %v521_v26 }
  0x31   :  { %208 = vmatpush.bf16.msra.mxu1 %v512_v10 }
  0x33   :  { %371 = vmatpush.bf16.msra.mxu3 %v529_v42 }
  0x34   :  { %290 = vmatpush.bf16.msra.mxu2 %v520_v27 }
  0x35   :  { %209 = vmatpush.bf16.msra.mxu1 %v511_v11 }
  0x37   :  { %372 = vmatpush.bf16.msra.mxu3 %v528_v43 }
  0x38   :  { %291 = vmatpush.bf16.msra.mxu2 %v519_v28 }
  0x3b   :  { %373 = vmatpush.bf16.msra.mxu3 %v527_v44 }
  0x98   :  { %v129_v17 = vpop.f32.mrf.mxu0 }
  0x99   :  { %v130_v19 = vadd.f32 %v129_v17, %v109_v18 }
  0x9b   :  { %v134_v22 = vmax.f32 %v130_v19, 0.0 }
  0xa0   :  { %v131_v20 = vpop.f32.mrf.mxu0 }
  0xa1   :  { %v132_v21 = vadd.f32 %v131_v20, %v109_v18 }
  0xa3   :  { %v135_v23 = vmax.f32 %v132_v21, 0.0 }
  0xa5   :  { %v136_v24 = vpack.c.bf16 %v135_v23, %v134_v22 }
  0xa7   :  { %210 = vmatmul.bf16.vlgmr.msra.gmra.mxu1 %v136_v24 }
 0x124   :  { %v211_v33 = vpop.f32.mrf.mxu1 }
 0x125   :  { %v212_v35 = vadd.f32 %v211_v33, %v153_v34 }
 0x127   :  { %v216_v38 = vmax.f32 %v212_v35, 0.0 }
 0x12c   :  { %v213_v36 = vpop.f32.mrf.mxu1 }
 0x12d   :  { %v214_v37 = vadd.f32 %v213_v36, %v153_v34 }
 0x12f   :  { %v217_v39 = vmax.f32 %v214_v37, 0.0 }
 0x131   :  { %v218_v40 = vpack.c.bf16 %v217_v39, %v216_v38 }
 0x133   :  { %292 = vmatmul.bf16.vlgmr.msra.gmra.mxu2 %v218_v40 }
 0x1b6   :  { %v293_v45 = vpop.f32.mrf.mxu2 }
 0x1b7   :  { %v294_v47 = vadd.f32 %v293_v45, %v235_v46 }
 0x1b9   :  { %v298_v50 = vmax.f32 %v294_v47, 0.0 }
 0x1be   :  { %v295_v48 = vpop.f32.mrf.mxu2 }
 0x1bf   :  { %v296_v49 = vadd.f32 %v295_v48, %v235_v46 }
 0x1c1   :  { %v299_v51 = vmax.f32 %v296_v49, 0.0 }
 0x1c3   :  { %v300_v52 = vpack.c.bf16 %v299_v51, %v298_v50 }
 0x1c5   :  { %374 = vmatmul.bf16.vlgmr.msra.gmra.mxu3 %v300_v52 }
 0x248   :  { %v375_v53 = vpop.f32.mrf.mxu3 }
 0x249   :  { %v376_v55 = vadd.f32 %v375_v53, %v317_v54 }
 0x24b   :  { %550 = vtanh.f32 %v376_v55 }
 0x250   :  { %v377_v56 = vpop.f32.mrf.mxu3 }
 0x251   :  { %v378_v57 = vadd.f32 %v377_v56, %v317_v54  ;;  %v551_v58 = vpop.eup %550 }
 0x252   :  { %v382_v60 = vmul.f32 2.0, %v551_v58 }
 0x253   :  { %552 = vtanh.f32 %v378_v57 }
 0x259   :  { %v553_v59 = vpop.eup %552 }
 0x25a   :  { %v383_v61 = vmul.f32 2.0, %v553_v59 }
 0x25c   :  { %v538_v62 = vpack.c.bf16 %v383_v61, %v382_v60 }
 0x25e   :  { %539 = vst [vmem:[#allocation11] sm:$0xff] %v538_v62  }
 0x25f   :  { %400 = dma.vmem_to_hbm [thread:$0]  %s393_s23, 128, %s395_s26, [#allocation4], %s707_s29, %s707_s29, %s708_s30  }
 0x260   :  { %704 = dma.done.wait [#allocation4], 128  }
 0x261   :  { %705 = vsyncadd [#allocation4], 4294967168 }
 0x262   :  { %405 = vsyncpa [#allocation3], 1 }
 0x263   :  { %406 = vsyncpa [#allocation6], 1 }
 0x264   :  { %407 = vsyncpa [#allocation9], 1 }
 0x265   :  { %408 = vsyncpa [#allocation4], 1 }

</bundles_post_ra>
